<compile_context>
chip_gen: v7x
topology: tpu7x:2x2x1
jax: 0.10.0
libtpu: 0.0.40
codegen_flags: <defaults>
</compile_context>

<pallas_src>
import functools

import jax
import jax.numpy as jnp
import numpy as np
from jax.experimental import pallas as pl
from jax.experimental.pallas import tpu as pltpu


# ----------------------------- kernel helpers -------------------------------

def _align_block(xin, c_in, c_out, T, aw_ref, ab_ref):
    """Fused Align module for one batch element.

    xin:    (c_in*T, N) value (channel-major rows)
    aw_ref: (c_out*c_in,) SMEM, row-major [o, c] -- 1x1 conv weight
    ab_ref: (c_out,)      SMEM                   -- 1x1 conv bias

    Returns (x0, slabs):
      x0:    (c_live*T, N) aligned activation, c_live = min(c_in, c_out)
      slabs: list of c_live (T, N) views of x0
    Channels c_live..c_out-1 (zero-pad case) are implicitly zero and skipped
    everywhere downstream.
    """
    if c_in > c_out:
        xin_slabs = [xin[c * T:(c + 1) * T, :] for c in range(c_in)]
        slabs = []
        for o in range(c_out):
            acc = ab_ref[o] + aw_ref[o * c_in] * xin_slabs[0]
            for c in range(1, c_in):
                acc = acc + aw_ref[o * c_in + c] * xin_slabs[c]
            slabs.append(acc)
        return jnp.concatenate(slabs, axis=0), slabs
    # c_in <= c_out: identity on the live channels; pad channels stay zero.
    slabs = [xin[c * T:(c + 1) * T, :] for c in range(c_in)]
    return xin, slabs


# ----------------------------- Pallas kernels -------------------------------

def _cheb_gc_kernel(Ks, c_in, c_out, T,
                    x_ref, gsoT_ref, gso2T_ref, w_ref, b_ref, aw_ref, ab_ref,
                    o_ref):
    """Fused Align + ChebGraphConv + bias + residual for one batch element.

    x_ref:    (1, c_in*T, N)  raw input slab (NCHW order, C*T merged)
    gsoT_ref: (N, N)          gso^T          (VMEM resident)
    gso2T_ref:(N, N)          2*gso^T        (VMEM resident)
    w_ref:    (Ks*c_out*c_out,) SMEM Chebyshev weights, row-major [k, i, j]
    b_ref:    (c_out,)          SMEM bias
    aw_ref:   (c_out*c_in,)     SMEM Align conv weight
    ab_ref:   (c_out,)          SMEM Align conv bias
    o_ref:    (1, c_out*T, N)   output slab
    """
    c_live = min(c_in, c_out)
    xin = x_ref[0]                                       # (c_in*T, N)
    x0, x0_slabs = _align_block(xin, c_in, c_out, T, aw_ref, ab_ref)

    # Chebyshev recurrence: one (c_live*T, N) @ (N, N) MXU matmul per order.
    xk_slabs = [x0_slabs]
    if Ks >= 2:
        x_prev2 = x0
        x_prev1 = jnp.dot(x0, gsoT_ref[...], preferred_element_type=jnp.float32)
        xk_slabs.append([x_prev1[i * T:(i + 1) * T, :] for i in range(c_live)])
        for _k in range(2, Ks):
            x_k = (jnp.dot(x_prev1, gso2T_ref[...],
                           preferred_element_type=jnp.float32) - x_prev2)
            xk_slabs.append([x_k[i * T:(i + 1) * T, :] for i in range(c_live)])
            x_prev2, x_prev1 = x_prev1, x_k

    # Per-output-channel weight contraction (VPU FMAs) + bias + residual,
    # streamed straight into the output ref (static, sublane-aligned slices).
    for j in range(c_out):
        if j < c_live:
            acc = x0_slabs[j] + b_ref[j]                 # residual + bias
        else:                                            # zero-padded channel
            acc = jnp.zeros_like(xk_slabs[0][0]) + b_ref[j]
        for k in range(Ks):
            for i in range(c_live):
                acc = acc + w_ref[(k * c_out + i) * c_out + j] * xk_slabs[k][i]
        o_ref[0, j * T:(j + 1) * T, :] = acc.astype(o_ref.dtype)


def _graph_conv_kernel(c_in, c_out, T,
                       x_ref, gsoT_ref, w_ref, b_ref, aw_ref, ab_ref, o_ref):
    """Fused Align + GraphConv + bias + residual for one batch element."""
    c_live = min(c_in, c_out)
    xin = x_ref[0]                                       # (c_in*T, N)
    x0, x0_slabs = _align_block(xin, c_in, c_out, T, aw_ref, ab_ref)

    fm = jnp.dot(x0, gsoT_ref[...], preferred_element_type=jnp.float32)
    fm_slabs = [fm[i * T:(i + 1) * T, :] for i in range(c_live)]

    for j in range(c_out):
        if j < c_live:
            acc = x0_slabs[j] + b_ref[j]                 # residual + bias
        else:                                            # zero-padded channel
            acc = jnp.zeros_like(fm_slabs[0]) + b_ref[j]
        for i in range(c_live):
            acc = acc + w_ref[i * c_out + j] * fm_slabs[i]
        o_ref[0, j * T:(j + 1) * T, :] = acc.astype(o_ref.dtype)


# ----------------------------- Wrapper ---------------------------------------

def graph_conv_layer(x, gso, weight, bias, align_w, align_b, *,
                     graph_conv_type, c_in, c_out, Ks):
    """Forward pass of GraphConvLayer. x: (B, c_in, T, N) float32."""
    B, C_in, T, N = x.shape
    assert C_in == c_in

    # Free reshapes only (no transposes): (B, C, T, N) -> (B, C*T, N).
    x2 = x.reshape(B, c_in * T, N)
    gso_t = jnp.transpose(gso)                 # (N, N), tiny
    bias1 = bias.reshape(-1)                   # (c_out,)
    aw_flat = align_w.reshape(-1)              # (c_out*c_in,) row-major [o, c]
    ab1 = align_b.reshape(-1)                  # (c_out,)
    w_flat = weight.reshape(-1)

    smem_spec = pl.BlockSpec(memory_space=pltpu.MemorySpace.SMEM)

    if graph_conv_type == "cheb_graph_conv":
        gso2_t = 2.0 * gso_t                   # hoist the 2x out of the loop
        kernel = functools.partial(_cheb_gc_kernel, Ks, c_in, c_out, T)
        operands = (x2, gso_t, gso2_t, w_flat, bias1, aw_flat, ab1)
        in_specs = [
            pl.BlockSpec((1, c_in * T, N), lambda i: (i, 0, 0)),   # x block
            pl.BlockSpec((N, N), lambda i: (0, 0)),                # gso^T
            pl.BlockSpec((N, N), lambda i: (0, 0)),                # 2*gso^T
            smem_spec, smem_spec, smem_spec, smem_spec,
        ]
    elif graph_conv_type == "graph_conv":
        kernel = functools.partial(_graph_conv_kernel, c_in, c_out, T)
        operands = (x2, gso_t, w_flat, bias1, aw_flat, ab1)
        in_specs = [
            pl.BlockSpec((1, c_in * T, N), lambda i: (i, 0, 0)),   # x block
            pl.BlockSpec((N, N), lambda i: (0, 0)),                # gso^T
            smem_spec, smem_spec, smem_spec, smem_spec,
        ]
    else:
        raise ValueError(f"unknown graph_conv_type {graph_conv_type}")

    out2 = pl.pallas_call(
        kernel,
        out_shape=jax.ShapeDtypeStruct((B, c_out * T, N), x.dtype),
        grid_spec=pltpu.PrefetchScalarGridSpec(
            num_scalar_prefetch=0,
            grid=(B,),                                   # >= 2 -> both v7x TCs
            in_specs=in_specs,
            out_specs=pl.BlockSpec((1, c_out * T, N), lambda i: (i, 0, 0)),
        ),
        compiler_params=pltpu.CompilerParams(
            dimension_semantics=("parallel",)),
    )(*operands)

    # Free reshape back to NCHW: (B, c_out*T, N) -> (B, c_out, T, N).
    return out2.reshape(B, c_out, T, N)


# ----------------------------- Pure-JAX reference ----------------------------

def _align(x, c_in, c_out, align_w, align_b):
    """Align module: 1x1 conv if c_in > c_out, zero channel pad if c_in < c_out."""
    if c_in > c_out:
        return jnp.einsum("oc,bctn->botn", align_w, x) + align_b[None, :, None, None]
    elif c_in < c_out:
        B, _, T, N = x.shape
        pad = jnp.zeros((B, c_out - c_in, T, N), x.dtype)
        return jnp.concatenate([x, pad], axis=1)
    else:
        return x


def _reference(x, gso, weight, bias, align_w, align_b, *,
               graph_conv_type, c_in, c_out, Ks):
    x_gc_in = _align(x, c_in, c_out, align_w, align_b)
    xp = jnp.transpose(x_gc_in, (0, 2, 3, 1))                  # (B, T, N, C)
    if graph_conv_type == "cheb_graph_conv":
        xs = [xp]
        if Ks >= 2:
            xs.append(jnp.einsum("hi,btij->bthj", gso, xp))
            for k in range(2, Ks):
                xs.append(jnp.einsum("hi,btij->bthj", 2.0 * gso, xs[k - 1])
                          - xs[k - 2])
        xstack = jnp.stack(xs, axis=2)
        gc = jnp.einsum("btkhi,kij->bthj", xstack, weight) + bias
    else:
        fm = jnp.einsum("hi,btij->bthj", gso, xp)
        gc = jnp.einsum("bthi,ij->bthj", fm, weight) + bias
    gc = jnp.transpose(gc, (0, 3, 1, 2))
    return gc + x_gc_in


# ----------------------------- Main ------------------------------------------

if __name__ == "__main__":
    B, c_in, c_out, T, N, Ks = 2, 6, 4, 8, 16, 3

    key = jax.random.PRNGKey(0)
    k_x, k_gso, k_w, k_b, k_aw, k_ab, k_wg = jax.random.split(key, 7)

    x = jax.random.normal(k_x, (B, c_in, T, N), dtype=jnp.float32)

    # Symmetric-ish deterministic graph shift operator.
    gso_raw = jax.random.normal(k_gso, (N, N), dtype=jnp.float32)
    gso = (gso_raw + gso_raw.T) / (2.0 * np.sqrt(N))

    # ChebGraphConv params (Ks, c_out, c_out); kaiming_uniform(a=sqrt(5))-style bounds.
    fan_in_cheb = c_out * c_out
    bnd_w = 1.0 / np.sqrt(fan_in_cheb)
    cheb_weight = jax.random.uniform(k_w, (Ks, c_out, c_out),
                                     minval=-bnd_w, maxval=bnd_w,
                                     dtype=jnp.float32)
    cheb_bias = jax.random.uniform(k_b, (c_out,), minval=-bnd_w, maxval=bnd_w,
                                   dtype=jnp.float32)

    # GraphConv params (c_out, c_out).
    gc_weight = jax.random.uniform(k_wg, (c_out, c_out),
                                   minval=-1.0 / np.sqrt(c_out),
                                   maxval=1.0 / np.sqrt(c_out),
                                   dtype=jnp.float32)
    gc_bias = cheb_bias  # reuse deterministic bias

    # Align 1x1 conv params (exercised since c_in > c_out).
    bnd_a = 1.0 / np.sqrt(c_in)
    align_w = jax.random.uniform(k_aw, (c_out, c_in),
                                 minval=-bnd_a, maxval=bnd_a, dtype=jnp.float32)
    align_b = jax.random.uniform(k_ab, (c_out,),
                                 minval=-bnd_a, maxval=bnd_a, dtype=jnp.float32)

    ok = True

    def _check(out, ref):
        global ok
        out = np.asarray(jax.block_until_ready(out))
        if out.shape != ref.shape:
            ok = False
        elif not np.allclose(out, np.asarray(ref), rtol=1e-5, atol=1e-5):
            ok = False

    # Case 1+2: c_in > c_out (Align 1x1 conv path), both conv types.
    for conv_type, w, b in (("cheb_graph_conv", cheb_weight, cheb_bias),
                            ("graph_conv", gc_weight, gc_bias)):
        out = graph_conv_layer(x, gso, w, b, align_w, align_b,
                               graph_conv_type=conv_type,
                               c_in=c_in, c_out=c_out, Ks=Ks)
        ref = _reference(x, gso, w, b, align_w, align_b,
                         graph_conv_type=conv_type,
                         c_in=c_in, c_out=c_out, Ks=Ks)
        _check(out, ref)

    # Case 3: c_in < c_out (zero-pad path) exercising the "live channel" skip.
    c_in_pad = 2
    x_pad = x[:, :c_in_pad]
    aw_pad = align_w[:, :c_in_pad]      # unused by this path, but required arg
    out = graph_conv_layer(x_pad, gso, cheb_weight, cheb_bias, aw_pad, align_b,
                           graph_conv_type="cheb_graph_conv",
                           c_in=c_in_pad, c_out=c_out, Ks=Ks)
    ref = _reference(x_pad, gso, cheb_weight, cheb_bias, aw_pad, align_b,
                     graph_conv_type="cheb_graph_conv",
                     c_in=c_in_pad, c_out=c_out, Ks=Ks)
    _check(out, ref)

    if ok:
        print("KERNEL_OK")
    else:
        print("KERNEL_MISMATCH")
</pallas_src>

<mosaic_0001>
module attributes {stable_mosaic.version = 11 : i64} {
  func.func @_cheb_gc_kernel(%arg0: i32, %arg1: memref<1x48x16xf32, #tpu.memory_space<vmem>>, %arg2: memref<16x16xf32, #tpu.memory_space<vmem>>, %arg3: memref<16x16xf32, #tpu.memory_space<vmem>>, %arg4: memref<48xf32, #tpu.memory_space<smem>>, %arg5: memref<4xf32, #tpu.memory_space<smem>>, %arg6: memref<24xf32, #tpu.memory_space<smem>>, %arg7: memref<4xf32, #tpu.memory_space<smem>>, %arg8: memref<1x32x16xf32, #tpu.memory_space<vmem>>) attributes {dimension_semantics = [#tpu.dimension_semantics<parallel>], iteration_bounds = array<i64: 2>, scalar_prefetch = 0 : i64, scratch_operands = 0 : i64, tpu.core_type = #tpu.core_type<tc>, window_params = [{transform_indices = @transform_0, window_bounds = array<i64: 1, 48, 16>}, {pipeline_mode = #tpu.pipeline_mode<synchronous>, transform_indices = @transform_1, window_bounds = array<i64: 16, 16>}, {pipeline_mode = #tpu.pipeline_mode<synchronous>, transform_indices = @transform_2, window_bounds = array<i64: 16, 16>}, {transform_indices = @transform_3, window_bounds = array<i64: 48>}, {transform_indices = @transform_4, window_bounds = array<i64: 4>}, {transform_indices = @transform_5, window_bounds = array<i64: 24>}, {transform_indices = @transform_6, window_bounds = array<i64: 4>}, {transform_indices = @transform_7, window_bounds = array<i64: 1, 32, 16>}]} {
    %c0 = arith.constant 0 : index
    %c0_0 = arith.constant 0 : index
    %c0_1 = arith.constant 0 : index
    %0 = vector.load %arg1[%c0, %c0_0, %c0_1] : memref<1x48x16xf32, #tpu.memory_space<vmem>>, vector<1x48x16xf32>
    %1 = vector.shape_cast %0 : vector<1x48x16xf32> to vector<48x16xf32>
    %2 = vector.extract_strided_slice %1 {offsets = [0, 0], sizes = [8, 16], strides = [1, 1]} : vector<48x16xf32> to vector<8x16xf32>
    %3 = vector.extract_strided_slice %1 {offsets = [8, 0], sizes = [8, 16], strides = [1, 1]} : vector<48x16xf32> to vector<8x16xf32>
    %4 = vector.extract_strided_slice %1 {offsets = [16, 0], sizes = [8, 16], strides = [1, 1]} : vector<48x16xf32> to vector<8x16xf32>
    %5 = vector.extract_strided_slice %1 {offsets = [24, 0], sizes = [8, 16], strides = [1, 1]} : vector<48x16xf32> to vector<8x16xf32>
    %6 = vector.extract_strided_slice %1 {offsets = [32, 0], sizes = [8, 16], strides = [1, 1]} : vector<48x16xf32> to vector<8x16xf32>
    %7 = vector.extract_strided_slice %1 {offsets = [40, 0], sizes = [8, 16], strides = [1, 1]} : vector<48x16xf32> to vector<8x16xf32>
    %c0_2 = arith.constant 0 : index
    %8 = memref.load %arg7[%c0_2] : memref<4xf32, #tpu.memory_space<smem>>
    %c0_3 = arith.constant 0 : index
    %9 = memref.load %arg6[%c0_3] : memref<24xf32, #tpu.memory_space<smem>>
    %10 = vector.broadcast %9 : f32 to vector<8x16xf32>
    %11 = arith.mulf %10, %2 : vector<8x16xf32>
    %12 = vector.broadcast %8 : f32 to vector<8x16xf32>
    %13 = arith.addf %12, %11 : vector<8x16xf32>
    %c1 = arith.constant 1 : index
    %14 = memref.load %arg6[%c1] : memref<24xf32, #tpu.memory_space<smem>>
    %15 = vector.broadcast %14 : f32 to vector<8x16xf32>
    %16 = arith.mulf %15, %3 : vector<8x16xf32>
    %17 = arith.addf %13, %16 : vector<8x16xf32>
    %c2 = arith.constant 2 : index
    %18 = memref.load %arg6[%c2] : memref<24xf32, #tpu.memory_space<smem>>
    %19 = vector.broadcast %18 : f32 to vector<8x16xf32>
    %20 = arith.mulf %19, %4 : vector<8x16xf32>
    %21 = arith.addf %17, %20 : vector<8x16xf32>
    %c3 = arith.constant 3 : index
    %22 = memref.load %arg6[%c3] : memref<24xf32, #tpu.memory_space<smem>>
    %23 = vector.broadcast %22 : f32 to vector<8x16xf32>
    %24 = arith.mulf %23, %5 : vector<8x16xf32>
    %25 = arith.addf %21, %24 : vector<8x16xf32>
    %c4 = arith.constant 4 : index
    %26 = memref.load %arg6[%c4] : memref<24xf32, #tpu.memory_space<smem>>
    %27 = vector.broadcast %26 : f32 to vector<8x16xf32>
    %28 = arith.mulf %27, %6 : vector<8x16xf32>
    %29 = arith.addf %25, %28 : vector<8x16xf32>
    %c5 = arith.constant 5 : index
    %30 = memref.load %arg6[%c5] : memref<24xf32, #tpu.memory_space<smem>>
    %31 = vector.broadcast %30 : f32 to vector<8x16xf32>
    %32 = arith.mulf %31, %7 : vector<8x16xf32>
    %33 = arith.addf %29, %32 : vector<8x16xf32>
    %c1_4 = arith.constant 1 : index
    %34 = memref.load %arg7[%c1_4] : memref<4xf32, #tpu.memory_space<smem>>
    %c6 = arith.constant 6 : index
    %35 = memref.load %arg6[%c6] : memref<24xf32, #tpu.memory_space<smem>>
    %36 = vector.broadcast %35 : f32 to vector<8x16xf32>
    %37 = arith.mulf %36, %2 : vector<8x16xf32>
    %38 = vector.broadcast %34 : f32 to vector<8x16xf32>
    %39 = arith.addf %38, %37 : vector<8x16xf32>
    %c7 = arith.constant 7 : index
    %40 = memref.load %arg6[%c7] : memref<24xf32, #tpu.memory_space<smem>>
    %41 = vector.broadcast %40 : f32 to vector<8x16xf32>
    %42 = arith.mulf %41, %3 : vector<8x16xf32>
    %43 = arith.addf %39, %42 : vector<8x16xf32>
    %c8 = arith.constant 8 : index
    %44 = memref.load %arg6[%c8] : memref<24xf32, #tpu.memory_space<smem>>
    %45 = vector.broadcast %44 : f32 to vector<8x16xf32>
    %46 = arith.mulf %45, %4 : vector<8x16xf32>
    %47 = arith.addf %43, %46 : vector<8x16xf32>
    %c9 = arith.constant 9 : index
    %48 = memref.load %arg6[%c9] : memref<24xf32, #tpu.memory_space<smem>>
    %49 = vector.broadcast %48 : f32 to vector<8x16xf32>
    %50 = arith.mulf %49, %5 : vector<8x16xf32>
    %51 = arith.addf %47, %50 : vector<8x16xf32>
    %c10 = arith.constant 10 : index
    %52 = memref.load %arg6[%c10] : memref<24xf32, #tpu.memory_space<smem>>
    %53 = vector.broadcast %52 : f32 to vector<8x16xf32>
    %54 = arith.mulf %53, %6 : vector<8x16xf32>
    %55 = arith.addf %51, %54 : vector<8x16xf32>
    %c11 = arith.constant 11 : index
    %56 = memref.load %arg6[%c11] : memref<24xf32, #tpu.memory_space<smem>>
    %57 = vector.broadcast %56 : f32 to vector<8x16xf32>
    %58 = arith.mulf %57, %7 : vector<8x16xf32>
    %59 = arith.addf %55, %58 : vector<8x16xf32>
    %c2_5 = arith.constant 2 : index
    %60 = memref.load %arg7[%c2_5] : memref<4xf32, #tpu.memory_space<smem>>
    %c12 = arith.constant 12 : index
    %61 = memref.load %arg6[%c12] : memref<24xf32, #tpu.memory_space<smem>>
    %62 = vector.broadcast %61 : f32 to vector<8x16xf32>
    %63 = arith.mulf %62, %2 : vector<8x16xf32>
    %64 = vector.broadcast %60 : f32 to vector<8x16xf32>
    %65 = arith.addf %64, %63 : vector<8x16xf32>
    %c13 = arith.constant 13 : index
    %66 = memref.load %arg6[%c13] : memref<24xf32, #tpu.memory_space<smem>>
    %67 = vector.broadcast %66 : f32 to vector<8x16xf32>
    %68 = arith.mulf %67, %3 : vector<8x16xf32>
    %69 = arith.addf %65, %68 : vector<8x16xf32>
    %c14 = arith.constant 14 : index
    %70 = memref.load %arg6[%c14] : memref<24xf32, #tpu.memory_space<smem>>
    %71 = vector.broadcast %70 : f32 to vector<8x16xf32>
    %72 = arith.mulf %71, %4 : vector<8x16xf32>
    %73 = arith.addf %69, %72 : vector<8x16xf32>
    %c15 = arith.constant 15 : index
    %74 = memref.load %arg6[%c15] : memref<24xf32, #tpu.memory_space<smem>>
    %75 = vector.broadcast %74 : f32 to vector<8x16xf32>
    %76 = arith.mulf %75, %5 : vector<8x16xf32>
    %77 = arith.addf %73, %76 : vector<8x16xf32>
    %c16 = arith.constant 16 : index
    %78 = memref.load %arg6[%c16] : memref<24xf32, #tpu.memory_space<smem>>
    %79 = vector.broadcast %78 : f32 to vector<8x16xf32>
    %80 = arith.mulf %79, %6 : vector<8x16xf32>
    %81 = arith.addf %77, %80 : vector<8x16xf32>
    %c17 = arith.constant 17 : index
    %82 = memref.load %arg6[%c17] : memref<24xf32, #tpu.memory_space<smem>>
    %83 = vector.broadcast %82 : f32 to vector<8x16xf32>
    %84 = arith.mulf %83, %7 : vector<8x16xf32>
    %85 = arith.addf %81, %84 : vector<8x16xf32>
    %c3_6 = arith.constant 3 : index
    %86 = memref.load %arg7[%c3_6] : memref<4xf32, #tpu.memory_space<smem>>
    %c18 = arith.constant 18 : index
    %87 = memref.load %arg6[%c18] : memref<24xf32, #tpu.memory_space<smem>>
    %88 = vector.broadcast %87 : f32 to vector<8x16xf32>
    %89 = arith.mulf %88, %2 : vector<8x16xf32>
    %90 = vector.broadcast %86 : f32 to vector<8x16xf32>
    %91 = arith.addf %90, %89 : vector<8x16xf32>
    %c19 = arith.constant 19 : index
    %92 = memref.load %arg6[%c19] : memref<24xf32, #tpu.memory_space<smem>>
    %93 = vector.broadcast %92 : f32 to vector<8x16xf32>
    %94 = arith.mulf %93, %3 : vector<8x16xf32>
    %95 = arith.addf %91, %94 : vector<8x16xf32>
    %c20 = arith.constant 20 : index
    %96 = memref.load %arg6[%c20] : memref<24xf32, #tpu.memory_space<smem>>
    %97 = vector.broadcast %96 : f32 to vector<8x16xf32>
    %98 = arith.mulf %97, %4 : vector<8x16xf32>
    %99 = arith.addf %95, %98 : vector<8x16xf32>
    %c21 = arith.constant 21 : index
    %100 = memref.load %arg6[%c21] : memref<24xf32, #tpu.memory_space<smem>>
    %101 = vector.broadcast %100 : f32 to vector<8x16xf32>
    %102 = arith.mulf %101, %5 : vector<8x16xf32>
    %103 = arith.addf %99, %102 : vector<8x16xf32>
    %c22 = arith.constant 22 : index
    %104 = memref.load %arg6[%c22] : memref<24xf32, #tpu.memory_space<smem>>
    %105 = vector.broadcast %104 : f32 to vector<8x16xf32>
    %106 = arith.mulf %105, %6 : vector<8x16xf32>
    %107 = arith.addf %103, %106 : vector<8x16xf32>
    %c23 = arith.constant 23 : index
    %108 = memref.load %arg6[%c23] : memref<24xf32, #tpu.memory_space<smem>>
    %109 = vector.broadcast %108 : f32 to vector<8x16xf32>
    %110 = arith.mulf %109, %7 : vector<8x16xf32>
    %111 = arith.addf %107, %110 : vector<8x16xf32>
    %112 = tpu.concatenate %33, %59, %85, %111 in 0 : vector<8x16xf32>, vector<8x16xf32>, vector<8x16xf32>, vector<8x16xf32> -> vector<32x16xf32>
    %c0_7 = arith.constant 0 : index
    %c0_8 = arith.constant 0 : index
    %113 = vector.load %arg2[%c0_7, %c0_8] : memref<16x16xf32, #tpu.memory_space<vmem>>, vector<16x16xf32>
    %cst = arith.constant dense<0.000000e+00> : vector<32x16xf32>
    %114 = tpu.matmul %112, %113, %cst {dimension_numbers = #tpu.dot_dimension_numbers<[1], [0], [0], [1], [0, 0, 1, 1], [], []>} : vector<32x16xf32>, vector<16x16xf32>, vector<32x16xf32> -> vector<32x16xf32>
    %115 = vector.extract_strided_slice %114 {offsets = [0, 0], sizes = [8, 16], strides = [1, 1]} : vector<32x16xf32> to vector<8x16xf32>
    %116 = vector.extract_strided_slice %114 {offsets = [8, 0], sizes = [8, 16], strides = [1, 1]} : vector<32x16xf32> to vector<8x16xf32>
    %117 = vector.extract_strided_slice %114 {offsets = [16, 0], sizes = [8, 16], strides = [1, 1]} : vector<32x16xf32> to vector<8x16xf32>
    %118 = vector.extract_strided_slice %114 {offsets = [24, 0], sizes = [8, 16], strides = [1, 1]} : vector<32x16xf32> to vector<8x16xf32>
    %c0_9 = arith.constant 0 : index
    %c0_10 = arith.constant 0 : index
    %119 = vector.load %arg3[%c0_9, %c0_10] : memref<16x16xf32, #tpu.memory_space<vmem>>, vector<16x16xf32>
    %cst_11 = arith.constant dense<0.000000e+00> : vector<32x16xf32>
    %120 = tpu.matmul %114, %119, %cst_11 {dimension_numbers = #tpu.dot_dimension_numbers<[1], [0], [0], [1], [0, 0, 1, 1], [], []>} : vector<32x16xf32>, vector<16x16xf32>, vector<32x16xf32> -> vector<32x16xf32>
    %121 = arith.subf %120, %112 : vector<32x16xf32>
    %122 = vector.extract_strided_slice %121 {offsets = [0, 0], sizes = [8, 16], strides = [1, 1]} : vector<32x16xf32> to vector<8x16xf32>
    %123 = vector.extract_strided_slice %121 {offsets = [8, 0], sizes = [8, 16], strides = [1, 1]} : vector<32x16xf32> to vector<8x16xf32>
    %124 = vector.extract_strided_slice %121 {offsets = [16, 0], sizes = [8, 16], strides = [1, 1]} : vector<32x16xf32> to vector<8x16xf32>
    %125 = vector.extract_strided_slice %121 {offsets = [24, 0], sizes = [8, 16], strides = [1, 1]} : vector<32x16xf32> to vector<8x16xf32>
    %c0_12 = arith.constant 0 : index
    %126 = memref.load %arg5[%c0_12] : memref<4xf32, #tpu.memory_space<smem>>
    %127 = vector.broadcast %126 : f32 to vector<8x16xf32>
    %128 = arith.addf %33, %127 : vector<8x16xf32>
    %c0_13 = arith.constant 0 : index
    %129 = memref.load %arg4[%c0_13] : memref<48xf32, #tpu.memory_space<smem>>
    %130 = vector.broadcast %129 : f32 to vector<8x16xf32>
    %131 = arith.mulf %130, %33 : vector<8x16xf32>
    %132 = arith.addf %128, %131 : vector<8x16xf32>
    %c4_14 = arith.constant 4 : index
    %133 = memref.load %arg4[%c4_14] : memref<48xf32, #tpu.memory_space<smem>>
    %134 = vector.broadcast %133 : f32 to vector<8x16xf32>
    %135 = arith.mulf %134, %59 : vector<8x16xf32>
    %136 = arith.addf %132, %135 : vector<8x16xf32>
    %c8_15 = arith.constant 8 : index
    %137 = memref.load %arg4[%c8_15] : memref<48xf32, #tpu.memory_space<smem>>
    %138 = vector.broadcast %137 : f32 to vector<8x16xf32>
    %139 = arith.mulf %138, %85 : vector<8x16xf32>
    %140 = arith.addf %136, %139 : vector<8x16xf32>
    %c12_16 = arith.constant 12 : index
    %141 = memref.load %arg4[%c12_16] : memref<48xf32, #tpu.memory_space<smem>>
    %142 = vector.broadcast %141 : f32 to vector<8x16xf32>
    %143 = arith.mulf %142, %111 : vector<8x16xf32>
    %144 = arith.addf %140, %143 : vector<8x16xf32>
    %c16_17 = arith.constant 16 : index
    %145 = memref.load %arg4[%c16_17] : memref<48xf32, #tpu.memory_space<smem>>
    %146 = vector.broadcast %145 : f32 to vector<8x16xf32>
    %147 = arith.mulf %146, %115 : vector<8x16xf32>
    %148 = arith.addf %144, %147 : vector<8x16xf32>
    %c20_18 = arith.constant 20 : index
    %149 = memref.load %arg4[%c20_18] : memref<48xf32, #tpu.memory_space<smem>>
    %150 = vector.broadcast %149 : f32 to vector<8x16xf32>
    %151 = arith.mulf %150, %116 : vector<8x16xf32>
    %152 = arith.addf %148, %151 : vector<8x16xf32>
    %c24 = arith.constant 24 : index
    %153 = memref.load %arg4[%c24] : memref<48xf32, #tpu.memory_space<smem>>
    %154 = vector.broadcast %153 : f32 to vector<8x16xf32>
    %155 = arith.mulf %154, %117 : vector<8x16xf32>
    %156 = arith.addf %152, %155 : vector<8x16xf32>
    %c28 = arith.constant 28 : index
    %157 = memref.load %arg4[%c28] : memref<48xf32, #tpu.memory_space<smem>>
    %158 = vector.broadcast %157 : f32 to vector<8x16xf32>
    %159 = arith.mulf %158, %118 : vector<8x16xf32>
    %160 = arith.addf %156, %159 : vector<8x16xf32>
    %c32 = arith.constant 32 : index
    %161 = memref.load %arg4[%c32] : memref<48xf32, #tpu.memory_space<smem>>
    %162 = vector.broadcast %161 : f32 to vector<8x16xf32>
    %163 = arith.mulf %162, %122 : vector<8x16xf32>
    %164 = arith.addf %160, %163 : vector<8x16xf32>
    %c36 = arith.constant 36 : index
    %165 = memref.load %arg4[%c36] : memref<48xf32, #tpu.memory_space<smem>>
    %166 = vector.broadcast %165 : f32 to vector<8x16xf32>
    %167 = arith.mulf %166, %123 : vector<8x16xf32>
    %168 = arith.addf %164, %167 : vector<8x16xf32>
    %c40 = arith.constant 40 : index
    %169 = memref.load %arg4[%c40] : memref<48xf32, #tpu.memory_space<smem>>
    %170 = vector.broadcast %169 : f32 to vector<8x16xf32>
    %171 = arith.mulf %170, %124 : vector<8x16xf32>
    %172 = arith.addf %168, %171 : vector<8x16xf32>
    %c44 = arith.constant 44 : index
    %173 = memref.load %arg4[%c44] : memref<48xf32, #tpu.memory_space<smem>>
    %174 = vector.broadcast %173 : f32 to vector<8x16xf32>
    %175 = arith.mulf %174, %125 : vector<8x16xf32>
    %176 = arith.addf %172, %175 : vector<8x16xf32>
    %c0_19 = arith.constant 0 : index
    %c0_20 = arith.constant 0 : index
    %c0_21 = arith.constant 0 : index
    %177 = vector.load %arg8[%c0_19, %c0_20, %c0_21] : memref<1x32x16xf32, #tpu.memory_space<vmem>>, vector<1x8x16xf32>
    %178 = vector.shape_cast %177 : vector<1x8x16xf32> to vector<8x16xf32>
    %179 = vector.shape_cast %176 : vector<8x16xf32> to vector<1x8x16xf32>
    tpu.vector_store %arg8[%c0_19, %c0_20, %c0_21], %179 {strides = array<i32>} : memref<1x32x16xf32, #tpu.memory_space<vmem>>, vector<1x8x16xf32>,
    %c1_22 = arith.constant 1 : index
    %180 = memref.load %arg5[%c1_22] : memref<4xf32, #tpu.memory_space<smem>>
    %181 = vector.broadcast %180 : f32 to vector<8x16xf32>
    %182 = arith.addf %59, %181 : vector<8x16xf32>
    %c1_23 = arith.constant 1 : index
    %183 = memref.load %arg4[%c1_23] : memref<48xf32, #tpu.memory_space<smem>>
    %184 = vector.broadcast %183 : f32 to vector<8x16xf32>
    %185 = arith.mulf %184, %33 : vector<8x16xf32>
    %186 = arith.addf %182, %185 : vector<8x16xf32>
    %c5_24 = arith.constant 5 : index
    %187 = memref.load %arg4[%c5_24] : memref<48xf32, #tpu.memory_space<smem>>
    %188 = vector.broadcast %187 : f32 to vector<8x16xf32>
    %189 = arith.mulf %188, %59 : vector<8x16xf32>
    %190 = arith.addf %186, %189 : vector<8x16xf32>
    %c9_25 = arith.constant 9 : index
    %191 = memref.load %arg4[%c9_25] : memref<48xf32, #tpu.memory_space<smem>>
    %192 = vector.broadcast %191 : f32 to vector<8x16xf32>
    %193 = arith.mulf %192, %85 : vector<8x16xf32>
    %194 = arith.addf %190, %193 : vector<8x16xf32>
    %c13_26 = arith.constant 13 : index
    %195 = memref.load %arg4[%c13_26] : memref<48xf32, #tpu.memory_space<smem>>
    %196 = vector.broadcast %195 : f32 to vector<8x16xf32>
    %197 = arith.mulf %196, %111 : vector<8x16xf32>
    %198 = arith.addf %194, %197 : vector<8x16xf32>
    %c17_27 = arith.constant 17 : index
    %199 = memref.load %arg4[%c17_27] : memref<48xf32, #tpu.memory_space<smem>>
    %200 = vector.broadcast %199 : f32 to vector<8x16xf32>
    %201 = arith.mulf %200, %115 : vector<8x16xf32>
    %202 = arith.addf %198, %201 : vector<8x16xf32>
    %c21_28 = arith.constant 21 : index
    %203 = memref.load %arg4[%c21_28] : memref<48xf32, #tpu.memory_space<smem>>
    %204 = vector.broadcast %203 : f32 to vector<8x16xf32>
    %205 = arith.mulf %204, %116 : vector<8x16xf32>
    %206 = arith.addf %202, %205 : vector<8x16xf32>
    %c25 = arith.constant 25 : index
    %207 = memref.load %arg4[%c25] : memref<48xf32, #tpu.memory_space<smem>>
    %208 = vector.broadcast %207 : f32 to vector<8x16xf32>
    %209 = arith.mulf %208, %117 : vector<8x16xf32>
    %210 = arith.addf %206, %209 : vector<8x16xf32>
    %c29 = arith.constant 29 : index
    %211 = memref.load %arg4[%c29] : memref<48xf32, #tpu.memory_space<smem>>
    %212 = vector.broadcast %211 : f32 to vector<8x16xf32>
    %213 = arith.mulf %212, %118 : vector<8x16xf32>
    %214 = arith.addf %210, %213 : vector<8x16xf32>
    %c33 = arith.constant 33 : index
    %215 = memref.load %arg4[%c33] : memref<48xf32, #tpu.memory_space<smem>>
    %216 = vector.broadcast %215 : f32 to vector<8x16xf32>
    %217 = arith.mulf %216, %122 : vector<8x16xf32>
    %218 = arith.addf %214, %217 : vector<8x16xf32>
    %c37 = arith.constant 37 : index
    %219 = memref.load %arg4[%c37] : memref<48xf32, #tpu.memory_space<smem>>
    %220 = vector.broadcast %219 : f32 to vector<8x16xf32>
    %221 = arith.mulf %220, %123 : vector<8x16xf32>
    %222 = arith.addf %218, %221 : vector<8x16xf32>
    %c41 = arith.constant 41 : index
    %223 = memref.load %arg4[%c41] : memref<48xf32, #tpu.memory_space<smem>>
    %224 = vector.broadcast %223 : f32 to vector<8x16xf32>
    %225 = arith.mulf %224, %124 : vector<8x16xf32>
    %226 = arith.addf %222, %225 : vector<8x16xf32>
    %c45 = arith.constant 45 : index
    %227 = memref.load %arg4[%c45] : memref<48xf32, #tpu.memory_space<smem>>
    %228 = vector.broadcast %227 : f32 to vector<8x16xf32>
    %229 = arith.mulf %228, %125 : vector<8x16xf32>
    %230 = arith.addf %226, %229 : vector<8x16xf32>
    %c0_29 = arith.constant 0 : index
    %c8_30 = arith.constant 8 : index
    %c0_31 = arith.constant 0 : index
    %231 = vector.load %arg8[%c0_29, %c8_30, %c0_31] : memref<1x32x16xf32, #tpu.memory_space<vmem>>, vector<1x8x16xf32>
    %232 = vector.shape_cast %231 : vector<1x8x16xf32> to vector<8x16xf32>
    %233 = vector.shape_cast %230 : vector<8x16xf32> to vector<1x8x16xf32>
    tpu.vector_store %arg8[%c0_29, %c8_30, %c0_31], %233 {strides = array<i32>} : memref<1x32x16xf32, #tpu.memory_space<vmem>>, vector<1x8x16xf32>,
    %c2_32 = arith.constant 2 : index
    %234 = memref.load %arg5[%c2_32] : memref<4xf32, #tpu.memory_space<smem>>
    %235 = vector.broadcast %234 : f32 to vector<8x16xf32>
    %236 = arith.addf %85, %235 : vector<8x16xf32>
    %c2_33 = arith.constant 2 : index
    %237 = memref.load %arg4[%c2_33] : memref<48xf32, #tpu.memory_space<smem>>
    %238 = vector.broadcast %237 : f32 to vector<8x16xf32>
    %239 = arith.mulf %238, %33 : vector<8x16xf32>
    %240 = arith.addf %236, %239 : vector<8x16xf32>
    %c6_34 = arith.constant 6 : index
    %241 = memref.load %arg4[%c6_34] : memref<48xf32, #tpu.memory_space<smem>>
    %242 = vector.broadcast %241 : f32 to vector<8x16xf32>
    %243 = arith.mulf %242, %59 : vector<8x16xf32>
    %244 = arith.addf %240, %243 : vector<8x16xf32>
    %c10_35 = arith.constant 10 : index
    %245 = memref.load %arg4[%c10_35] : memref<48xf32, #tpu.memory_space<smem>>
    %246 = vector.broadcast %245 : f32 to vector<8x16xf32>
    %247 = arith.mulf %246, %85 : vector<8x16xf32>
    %248 = arith.addf %244, %247 : vector<8x16xf32>
    %c14_36 = arith.constant 14 : index
    %249 = memref.load %arg4[%c14_36] : memref<48xf32, #tpu.memory_space<smem>>
    %250 = vector.broadcast %249 : f32 to vector<8x16xf32>
    %251 = arith.mulf %250, %111 : vector<8x16xf32>
    %252 = arith.addf %248, %251 : vector<8x16xf32>
    %c18_37 = arith.constant 18 : index
    %253 = memref.load %arg4[%c18_37] : memref<48xf32, #tpu.memory_space<smem>>
    %254 = vector.broadcast %253 : f32 to vector<8x16xf32>
    %255 = arith.mulf %254, %115 : vector<8x16xf32>
    %256 = arith.addf %252, %255 : vector<8x16xf32>
    %c22_38 = arith.constant 22 : index
    %257 = memref.load %arg4[%c22_38] : memref<48xf32, #tpu.memory_space<smem>>
    %258 = vector.broadcast %257 : f32 to vector<8x16xf32>
    %259 = arith.mulf %258, %116 : vector<8x16xf32>
    %260 = arith.addf %256, %259 : vector<8x16xf32>
    %c26 = arith.constant 26 : index
    %261 = memref.load %arg4[%c26] : memref<48xf32, #tpu.memory_space<smem>>
    %262 = vector.broadcast %261 : f32 to vector<8x16xf32>
    %263 = arith.mulf %262, %117 : vector<8x16xf32>
    %264 = arith.addf %260, %263 : vector<8x16xf32>
    %c30 = arith.constant 30 : index
    %265 = memref.load %arg4[%c30] : memref<48xf32, #tpu.memory_space<smem>>
    %266 = vector.broadcast %265 : f32 to vector<8x16xf32>
    %267 = arith.mulf %266, %118 : vector<8x16xf32>
    %268 = arith.addf %264, %267 : vector<8x16xf32>
    %c34 = arith.constant 34 : index
    %269 = memref.load %arg4[%c34] : memref<48xf32, #tpu.memory_space<smem>>
    %270 = vector.broadcast %269 : f32 to vector<8x16xf32>
    %271 = arith.mulf %270, %122 : vector<8x16xf32>
    %272 = arith.addf %268, %271 : vector<8x16xf32>
    %c38 = arith.constant 38 : index
    %273 = memref.load %arg4[%c38] : memref<48xf32, #tpu.memory_space<smem>>
    %274 = vector.broadcast %273 : f32 to vector<8x16xf32>
    %275 = arith.mulf %274, %123 : vector<8x16xf32>
    %276 = arith.addf %272, %275 : vector<8x16xf32>
    %c42 = arith.constant 42 : index
    %277 = memref.load %arg4[%c42] : memref<48xf32, #tpu.memory_space<smem>>
    %278 = vector.broadcast %277 : f32 to vector<8x16xf32>
    %279 = arith.mulf %278, %124 : vector<8x16xf32>
    %280 = arith.addf %276, %279 : vector<8x16xf32>
    %c46 = arith.constant 46 : index
    %281 = memref.load %arg4[%c46] : memref<48xf32, #tpu.memory_space<smem>>
    %282 = vector.broadcast %281 : f32 to vector<8x16xf32>
    %283 = arith.mulf %282, %125 : vector<8x16xf32>
    %284 = arith.addf %280, %283 : vector<8x16xf32>
    %c0_39 = arith.constant 0 : index
    %c16_40 = arith.constant 16 : index
    %c0_41 = arith.constant 0 : index
    %285 = vector.load %arg8[%c0_39, %c16_40, %c0_41] : memref<1x32x16xf32, #tpu.memory_space<vmem>>, vector<1x8x16xf32>
    %286 = vector.shape_cast %285 : vector<1x8x16xf32> to vector<8x16xf32>
    %287 = vector.shape_cast %284 : vector<8x16xf32> to vector<1x8x16xf32>
    tpu.vector_store %arg8[%c0_39, %c16_40, %c0_41], %287 {strides = array<i32>} : memref<1x32x16xf32, #tpu.memory_space<vmem>>, vector<1x8x16xf32>,
    %c3_42 = arith.constant 3 : index
    %288 = memref.load %arg5[%c3_42] : memref<4xf32, #tpu.memory_space<smem>>
    %289 = vector.broadcast %288 : f32 to vector<8x16xf32>
    %290 = arith.addf %111, %289 : vector<8x16xf32>
    %c3_43 = arith.constant 3 : index
    %291 = memref.load %arg4[%c3_43] : memref<48xf32, #tpu.memory_space<smem>>
    %292 = vector.broadcast %291 : f32 to vector<8x16xf32>
    %293 = arith.mulf %292, %33 : vector<8x16xf32>
    %294 = arith.addf %290, %293 : vector<8x16xf32>
    %c7_44 = arith.constant 7 : index
    %295 = memref.load %arg4[%c7_44] : memref<48xf32, #tpu.memory_space<smem>>
    %296 = vector.broadcast %295 : f32 to vector<8x16xf32>
    %297 = arith.mulf %296, %59 : vector<8x16xf32>
    %298 = arith.addf %294, %297 : vector<8x16xf32>
    %c11_45 = arith.constant 11 : index
    %299 = memref.load %arg4[%c11_45] : memref<48xf32, #tpu.memory_space<smem>>
    %300 = vector.broadcast %299 : f32 to vector<8x16xf32>
    %301 = arith.mulf %300, %85 : vector<8x16xf32>
    %302 = arith.addf %298, %301 : vector<8x16xf32>
    %c15_46 = arith.constant 15 : index
    %303 = memref.load %arg4[%c15_46] : memref<48xf32, #tpu.memory_space<smem>>
    %304 = vector.broadcast %303 : f32 to vector<8x16xf32>
    %305 = arith.mulf %304, %111 : vector<8x16xf32>
    %306 = arith.addf %302, %305 : vector<8x16xf32>
    %c19_47 = arith.constant 19 : index
    %307 = memref.load %arg4[%c19_47] : memref<48xf32, #tpu.memory_space<smem>>
    %308 = vector.broadcast %307 : f32 to vector<8x16xf32>
    %309 = arith.mulf %308, %115 : vector<8x16xf32>
    %310 = arith.addf %306, %309 : vector<8x16xf32>
    %c23_48 = arith.constant 23 : index
    %311 = memref.load %arg4[%c23_48] : memref<48xf32, #tpu.memory_space<smem>>
    %312 = vector.broadcast %311 : f32 to vector<8x16xf32>
    %313 = arith.mulf %312, %116 : vector<8x16xf32>
    %314 = arith.addf %310, %313 : vector<8x16xf32>
    %c27 = arith.constant 27 : index
    %315 = memref.load %arg4[%c27] : memref<48xf32, #tpu.memory_space<smem>>
    %316 = vector.broadcast %315 : f32 to vector<8x16xf32>
    %317 = arith.mulf %316, %117 : vector<8x16xf32>
    %318 = arith.addf %314, %317 : vector<8x16xf32>
    %c31 = arith.constant 31 : index
    %319 = memref.load %arg4[%c31] : memref<48xf32, #tpu.memory_space<smem>>
    %320 = vector.broadcast %319 : f32 to vector<8x16xf32>
    %321 = arith.mulf %320, %118 : vector<8x16xf32>
    %322 = arith.addf %318, %321 : vector<8x16xf32>
    %c35 = arith.constant 35 : index
    %323 = memref.load %arg4[%c35] : memref<48xf32, #tpu.memory_space<smem>>
    %324 = vector.broadcast %323 : f32 to vector<8x16xf32>
    %325 = arith.mulf %324, %122 : vector<8x16xf32>
    %326 = arith.addf %322, %325 : vector<8x16xf32>
    %c39 = arith.constant 39 : index
    %327 = memref.load %arg4[%c39] : memref<48xf32, #tpu.memory_space<smem>>
    %328 = vector.broadcast %327 : f32 to vector<8x16xf32>
    %329 = arith.mulf %328, %123 : vector<8x16xf32>
    %330 = arith.addf %326, %329 : vector<8x16xf32>
    %c43 = arith.constant 43 : index
    %331 = memref.load %arg4[%c43] : memref<48xf32, #tpu.memory_space<smem>>
    %332 = vector.broadcast %331 : f32 to vector<8x16xf32>
    %333 = arith.mulf %332, %124 : vector<8x16xf32>
    %334 = arith.addf %330, %333 : vector<8x16xf32>
    %c47 = arith.constant 47 : index
    %335 = memref.load %arg4[%c47] : memref<48xf32, #tpu.memory_space<smem>>
    %336 = vector.broadcast %335 : f32 to vector<8x16xf32>
    %337 = arith.mulf %336, %125 : vector<8x16xf32>
    %338 = arith.addf %334, %337 : vector<8x16xf32>
    %c0_49 = arith.constant 0 : index
    %c24_50 = arith.constant 24 : index
    %c0_51 = arith.constant 0 : index
    %339 = vector.load %arg8[%c0_49, %c24_50, %c0_51] : memref<1x32x16xf32, #tpu.memory_space<vmem>>, vector<1x8x16xf32>
    %340 = vector.shape_cast %339 : vector<1x8x16xf32> to vector<8x16xf32>
    %341 = vector.shape_cast %338 : vector<8x16xf32> to vector<1x8x16xf32>
    tpu.vector_store %arg8[%c0_49, %c24_50, %c0_51], %341 {strides = array<i32>} : memref<1x32x16xf32, #tpu.memory_space<vmem>>, vector<1x8x16xf32>,
    return
  }
  func.func @transform_0(%arg0: i32) -> (i32, i32, i32) {
    %c0_i32 = arith.constant 0 : i32
    %c0_i32_0 = arith.constant 0 : i32
    %c0_i32_1 = arith.constant 0 : i32
    return %arg0, %c0_i32, %c0_i32_0 : i32, i32, i32
  }
  func.func @transform_1(%arg0: i32) -> (i32, i32) {
    %c0_i32 = arith.constant 0 : i32
    %c0_i32_0 = arith.constant 0 : i32
    %c0_i32_1 = arith.constant 0 : i32
    return %c0_i32, %c0_i32_0 : i32, i32
  }
  func.func @transform_2(%arg0: i32) -> (i32, i32) {
    %c0_i32 = arith.constant 0 : i32
    %c0_i32_0 = arith.constant 0 : i32
    %c0_i32_1 = arith.constant 0 : i32
    return %c0_i32, %c0_i32_0 : i32, i32
  }
  func.func @transform_3(%arg0: i32) -> i32 {
    %c0_i32 = arith.constant 0 : i32
    %c0_i32_0 = arith.constant 0 : i32
    return %c0_i32 : i32
  }
  func.func @transform_4(%arg0: i32) -> i32 {
    %c0_i32 = arith.constant 0 : i32
    %c0_i32_0 = arith.constant 0 : i32
    return %c0_i32 : i32
  }
  func.func @transform_5(%arg0: i32) -> i32 {
    %c0_i32 = arith.constant 0 : i32
    %c0_i32_0 = arith.constant 0 : i32
    return %c0_i32 : i32
  }
  func.func @transform_6(%arg0: i32) -> i32 {
    %c0_i32 = arith.constant 0 : i32
    %c0_i32_0 = arith.constant 0 : i32
    return %c0_i32 : i32
  }
  func.func @transform_7(%arg0: i32) -> (i32, i32, i32) {
    %c0_i32 = arith.constant 0 : i32
    %c0_i32_0 = arith.constant 0 : i32
    %c0_i32_1 = arith.constant 0 : i32
    return %arg0, %c0_i32, %c0_i32_0 : i32, i32, i32
  }
}

</mosaic_0001>

<bundles_post_ra>
// kernel: tpu_custom_call.1
= control target key start
LH: loop header
LB: loop body
LE: loop exit
PB: predicated region body
PF: predicated region fallthrough
CT: control target
= control target key end

     0   :  { %12 = vsyncpa [#allocation3], 0  ;;  %s1665_s0 = inlined_call_operand.vmem [shape: f32[2,48,16], index: 0, kind: input, shape index: {}]   ;;  %s1666_s1 = inlined_call_operand.vmem [shape: f32[16,16], index: 1, kind: input, shape index: {}]   ;;  %s1667_s2 = inlined_call_operand.vmem [shape: f32[16,16], index: 2, kind: input, shape index: {}]   ;;  %s1668_s3 = inlined_call_operand.vmem [shape: f32[48], index: 3, kind: input, shape index: {}]   ;;  %s1669_s4 = inlined_call_operand.vmem [shape: f32[4], index: 4, kind: input, shape index: {}]   ;;  %s1670_s5 = inlined_call_operand.vmem [shape: f32[24], index: 5, kind: input, shape index: {}]   ;;  %s1671_s6 = inlined_call_operand.vmem [shape: f32[4], index: 6, kind: input, shape index: {}]   ;;  %s1672_s7 = inlined_call_operand.vmem [shape: f32[2,32,16], index: 7, kind: output, shape index: {}]  }
   0x1   :  { %13 = vsyncpa [#allocation5], 0 }
   0x2   :  { %14 = vsyncpa [#allocation8], 0  ;;  %s1265_s24 = smov 0  }
   0x3 LB: > { %s233_s27 = sshll.u32 %s1669_s4, 4  ;;  %s1274_s28 = sadd.s32 4294967295, %s1219_s24   ;;  %s1219_s24 = sphi %s1265_s24, %s20_s24   ;;  %s234_s27 = int_to_ptr.vmem [resolvable:$true] %s233_s27 }
   0x4   : > { %p950_p0 = scmp.ge.s32.totalorder %s1219_s24, 1  ;;  %p203_p1 = scmp.lt.s32.totalorder %s1219_s24, 3 }
   0x5   : > { %p1121_p2 = scmp.eq.s32.totalorder %s1274_s28, 0  ;;  %s222_s9 = sshll.u32 %s1668_s3, 4  ;;  %s1286_s9 = int_to_ptr.vmem [resolvable:$true] %s222_s9 }
   0x6   : > { %p1279_p3 = pnand %p950_p0, %p203_p1  ;;  %s244_s12 = sshll.u32 %s1670_s5, 4  ;;  %s1293_s12 = int_to_ptr.vmem [resolvable:$true] %s244_s12 }
   0x7   : > { %s255_s16 = sshll.u32 %s1671_s6, 4  ;;  %s1141_s17 = scalar_lea.vmem %s234_s27, 16  ;;  %s1304_s16 = int_to_ptr.vmem [resolvable:$true] %s255_s16 }
   0x8   : > { %p1108_p4 = pneg %p1279_p3  ;;  %p1142_p6 = scmp.ne.s32.totalorder %s234_s27, %s1141_s17 }
   0x9   : > { %p1149_p10 = scmp.lt.s32.totalorder %s234_s27, %s234_s27  ;;  %p1150_p11 = scmp.lt.s32.totalorder %s1141_s17, %s1141_s17 }
   0xa   : > { %p1297_p5 = pnand %p1121_p2, %p1108_p4 }
   0xb   : > { %p1151_p12 = por %p1150_p11, %p1149_p10 }
   0xc   : > { %p1143_p7 = pneg %p1297_p5 }
   0xe   : > { %p1144_p8 = pnand %p1143_p7, %p1142_p6 }
  0x10   : > { %p1145_p9 = pneg %p1144_p8 }
  0x12   : > { %p1152_p13 = pnand %p1151_p12, %p1145_p9 }
  0x14   : > { %1155 = shalt.err (!%p1152_p13)
}
  0x15   : > { %s1221_s18 = smov [#allocation4]   ;;  %s1156_s19 = scalar_lea.vmem %s1286_s9, 16 }
  0x16   : > { %1114 = dma.vmem_to_smem (!%p1297_p5), %s234_s27, 16, %s1221_s18, [#allocation5]  }
  0x17   : > { %p1157_p0 = scmp.ne.s32.totalorder %s1286_s9, %s1156_s19  ;;  %p1164_p6 = scmp.lt.s32.totalorder %s1286_s9, %s1286_s9 }
  0x18   : > { %p1165_p8 = scmp.lt.s32.totalorder %s1156_s19, %s1156_s19 }
  0x19   : > { %p1159_p1 = pnand %p1157_p0, %p1143_p7 }
  0x1a   : > { %p1166_p10 = por %p1165_p8, %p1164_p6 }
  0x1b   : > { %p1160_p4 = pneg %p1159_p1 }
  0x1d   : > { %p1167_p9 = pnand %p1166_p10, %p1160_p4 }
  0x1f   : > { %1170 = shalt.err (!%p1167_p9)
}
  0x20   : > { %s1222_s20 = smov [#allocation2]   ;;  %s1171_s21 = scalar_lea.vmem %s1293_s12, 16 }
  0x21   : > { %1111 = dma.vmem_to_smem (!%p1297_p5), %s1286_s9, 16, %s1222_s20, [#allocation3]  }
  0x22   : > { %p1172_p11 = scmp.ne.s32.totalorder %s1293_s12, %s1171_s21  ;;  %p1179_p0 = scmp.lt.s32.totalorder %s1293_s12, %s1293_s12 }
  0x23   : > { %p1180_p1 = scmp.lt.s32.totalorder %s1171_s21, %s1171_s21 }
  0x24   : > { %p1174_p12 = pnand %p1172_p11, %p1143_p7 }
  0x25   : > { %p1181_p4 = por %p1180_p1, %p1179_p0 }
  0x26   : > { %p1175_p13 = pneg %p1174_p12 }
  0x28   : > { %p1182_p6 = pnand %p1181_p4, %p1175_p13 }
  0x2a   : > { %1185 = shalt.err (!%p1182_p6)
}
  0x2b   : > { %s1223_s22 = smov [#allocation6]   ;;  %s1186_s23 = scalar_lea.vmem %s1304_s16, 16 }
  0x2c   : > { %1117 = dma.vmem_to_smem (!%p1297_p5), %s1293_s12, 16, %s1223_s22, [#allocation5]  }
  0x2d   : > { %p1187_p8 = scmp.ne.s32.totalorder %s1304_s16, %s1186_s23  ;;  %p1194_p11 = scmp.lt.s32.totalorder %s1304_s16, %s1304_s16 }
  0x2e   : > { %p1195_p12 = scmp.lt.s32.totalorder %s1186_s23, %s1186_s23 }
  0x2f   : > { %p1189_p10 = pnand %p1187_p8, %p1143_p7 }
  0x30   : > { %p1196_p13 = por %p1195_p12, %p1194_p11 }
  0x31   : > { %p1190_p9 = pneg %p1189_p10 }
  0x33   : > { %p1197_p0 = pnand %p1196_p13, %p1190_p9 }
  0x35   : > { %1200 = shalt.err (!%p1197_p0)
}
  0x36   : > { %s1224_s25 = smov [#allocation7]   ;;  %276 = sbr.rel (%p1279_p3) target bundleno = 540 (0x21c), region = 48 }
  0x37   : > { %1120 = dma.vmem_to_smem (!%p1297_p5), %s1304_s16, 16, %s1224_s25, [#allocation8]  }
  0x3d   : > { %1206 = dma.done.wait (%p1121_p2), [#allocation3], 16  }
  0x3e   : > { %1208 = vsyncadd (%p1121_p2), [#allocation3], 4294967280 }
  0x3f   : > { %1210 = dma.done.wait (%p1121_p2), [#allocation5], 32  }
  0x40   : > { %1212 = vsyncadd (%p1121_p2), [#allocation5], 4294967264 }
  0x41   : > { %1214 = dma.done.wait (%p1121_p2), [#allocation8], 16  }
  0x42   : > { %1216 = vsyncadd (%p1121_p2), [#allocation8], 4294967280 }
  0x43   : > { %294 = sfence }
  0x44   : > { %v441_v0 = vld [vmem:[%s1666_s1] sm:$0xff]  ;;  %v442_v1 = vld [vmem:[%s1666_s1 + $0x8] sm:$0xff]  ;;  %p321_p3 = scmp.lt.s32.totalorder %s1274_s28, 1  ;;  %s1364_s8 = sld [smem:[#allocation7]]  ;;  %vm443_vm0 = vcmask 130048  }
  0x45   : > { %v1083_v2 = vpack.c.bf16 %v442_v1, %v441_v0  ;;  %s338_s9 = sld [smem:[#allocation6]]  ;;  %s964_s10 = sld [smem:[#allocation6 + $0x1]]  ;;  %v541_v3 = vld [vmem:[%s1667_s2] sm:$0xff]  ;;  %v542_v4 = vld [vmem:[%s1667_s2 + $0x8] sm:$0xff] }
  0x46   : > { %s1676_s28 = smov (!%p321_p3, %s1274_s28), 1  ;;  %v1087_v5 = vpack.c.bf16 %v542_v4, %v541_v3  ;;  %s965_s15 = sld [smem:[#allocation6 + $0x2]] }
  0x47   : > { %1084 = vmatprep.subr.bf16.mxu0 %v1083_v2  ;;  %s1375_s16 = sld [smem:[#allocation6 + $0x3]]  ;;  %s1091_s17 = smul.u32 48, %s1676_s28 }
  0x48   : > { %1086 = vmatpush3.bf16.msra.mxu0 %v1083_v2  ;;  %s1378_s18 = sld [smem:[#allocation6 + $0x4]]  ;;  %1088 = vmatprep.subr.bf16.mxu1 %v1087_v5  ;;  %s1380_s19 = sld [smem:[#allocation6 + $0x5]] }
  0x49   : > { %s1382_s20 = sld [smem:[#allocation7 + $0x1]]  ;;  %1090 = vmatpush3.bf16.msra.mxu1 %v1087_v5  ;;  %s1387_s23 = scalar_lea.vmem %s1665_s0, %s1091_s17 }
  0x4a   : > { %v341_v6 = vstv %s1364_s8  ;;  %s1390_s25 = sld [smem:[#allocation6 + $0x6]]  ;;  %v1393_v7 = vld [vmem:[%s1387_s23] sm:$0xff]  ;;  %v1396_v8 = vld [vmem:[%s1387_s23 + $0x8] sm:$0xff]  ;;  %v1399_v9 = vld [vmem:[%s1387_s23 + $0x10] sm:$0xff]  ;;  %s1401_s26 = sld [smem:[#allocation6 + $0x7]] }
  0x4b   : > { %v339_v10 = vstv %s338_s9  ;;  %v344_v12 = vstv %s964_s10  ;;  %s1404_s27 = sld [smem:[#allocation6 + $0x8]]  ;;  %v1407_v13 = vld [vmem:[%s1387_s23 + $0x18] sm:$0xff]  ;;  %s1411_s29 = sld [smem:[#allocation6 + $0x9]]  ;;  %v1421_v19 = vld [vmem:[%s1387_s23 + $0x20] sm:$0xff] }
  0x4c   : > { %v340_v11 = vmul.f32 %v339_v10, %v1393_v7  ;;  %v345_v14 = vmul.f32 %v344_v12, %v1396_v8  ;;  %v348_v15 = vstv %s965_s15  ;;  %s1413_s30 = sld [smem:[#allocation6 + $0xa]]  ;;  %s1416_s8 = sld [smem:[#allocation6 + $0xb]]  ;;  %v1436_v25 = vld [vmem:[%s1387_s23 + $0x28] sm:$0xff] }
  0x4d   : > { %v352_v16 = vstv %s1375_s16  ;;  %v349_v18 = vmul.f32 %v348_v15, %v1399_v9  ;;  %s1418_s9 = sld [smem:[#allocation7 + $0x2]]  ;;  %s1424_s10 = sld [smem:[#allocation6 + $0xc]] }
  0x4e   : > { %v342_v17 = vadd.f32 %v341_v6, %v340_v11  ;;  %v356_v20 = vstv %s1378_s18  ;;  %s1426_s11 = sld [smem:[#allocation6 + $0xd]]  ;;  %v353_v22 = vmul.f32 %v352_v16, %v1407_v13  ;;  %s1431_s12 = sld [smem:[#allocation6 + $0xe]]  ;;  %v360_v26 = vstv %s1380_s19 }
  0x4f   : > { %v367_v24 = vstv %s1382_s20  ;;  %s1433_s13 = sld [smem:[#allocation6 + $0xf]]  ;;  %s1441_s14 = sld [smem:[#allocation6 + $0x10]]  ;;  %v357_v30 = vmul.f32 %v356_v20, %v1421_v19  ;;  %v361_v38 = vmul.f32 %v360_v26, %v1436_v25 }
  0x50   : > { %v346_v21 = vadd.f32 %v345_v14, %v342_v17  ;;  %v365_v23 = vstv %s1390_s25  ;;  %v370_v28 = vstv %s1401_s26  ;;  %s1443_s15 = sld [smem:[#allocation6 + $0x11]]  ;;  %s1448_s16 = sld [smem:[#allocation7 + $0x3]] }
  0x51   : > { %v366_v27 = vmul.f32 %v365_v23, %v1393_v7  ;;  %v371_v31 = vmul.f32 %v370_v28, %v1396_v8  ;;  %v374_v32 = vstv %s1404_s27  ;;  %s1450_s17 = sld [smem:[#allocation6 + $0x12]]  ;;  %v378_v35 = vstv %s1411_s29  ;;  %s1455_s18 = sld [smem:[#allocation6 + $0x13]] }
  0x52   : > { %v350_v29 = vadd.f32 %v349_v18, %v346_v21  ;;  %v375_v34 = vmul.f32 %v374_v32, %v1399_v9  ;;  %v382_v36 = vstv %s1413_s30  ;;  %s1457_s19 = sld [smem:[#allocation6 + $0x14]]  ;;  %v379_v39 = vmul.f32 %v378_v35, %v1407_v13  ;;  %s1462_s20 = sld [smem:[#allocation6 + $0x15]] }
  0x53   : > { %v368_v33 = vadd.f32 %v367_v24, %v366_v27  ;;  %v386_v40 = vstv %s1416_s8  ;;  %v383_v42 = vmul.f32 %v382_v36, %v1421_v19  ;;  %v391_v43 = vstv %s1424_s10  ;;  %s1467_s21 = sld [smem:[#allocation6 + $0x16]]  ;;  %s1475_s22 = sld [smem:[#allocation6 + $0x17]] }
  0x54   : > { %v354_v37 = vadd.f32 %v353_v22, %v350_v29  ;;  %v393_v44 = vstv %s1418_s9  ;;  %v392_v46 = vmul.f32 %v391_v43, %v1393_v7  ;;  %v396_v47 = vstv %s1426_s11  ;;  %s644_s23 = sld [smem:[#allocation4]]  ;;  %s1009_s26 = sld [smem:[#allocation4 + $0x1]] }
  0x55   : > { %v372_v41 = vadd.f32 %v371_v31, %v368_v33  ;;  %v400_v48 = vstv %s1431_s12  ;;  %v387_v50 = vmul.f32 %v386_v40, %v1436_v25  ;;  %v397_v51 = vmul.f32 %v396_v47, %v1396_v8  ;;  %s647_s25 = sld [smem:[#allocation2]]  ;;  %s1010_s27 = sld [smem:[#allocation2 + $0x1]] }
  0x56   : > { %v358_v45 = vadd.f32 %v357_v30, %v354_v37  ;;  %v404_v52 = vstv %s1433_s13  ;;  %v394_v54 = vadd.f32 %v393_v44, %v392_v46  ;;  %v401_v55 = vmul.f32 %v400_v48, %v1399_v9  ;;  %s1022_s29 = sld [smem:[#allocation4 + $0x2]]  ;;  %s1035_s8 = sld [smem:[#allocation4 + $0x3]] }
  0x57   : > { %v376_v49 = vadd.f32 %v375_v34, %v372_v41  ;;  %v408_v56 = vstv %s1441_s14  ;;  %v405_v58 = vmul.f32 %v404_v52, %v1407_v13  ;;  %v417_v60 = vstv %s1450_s17  ;;  %s1023_s30 = sld [smem:[#allocation2 + $0x2]]  ;;  %s1036_s9 = sld [smem:[#allocation2 + $0x3]] }
  0x58   : > { %v1477_v53 = vadd.f32 %v361_v38, %v358_v45  ;;  %v409_v59 = vmul.f32 %v408_v56, %v1421_v19  ;;  %v398_v61 = vadd.f32 %v397_v51, %v394_v54  ;;  %v412_v62 = vstv %s1443_s15  ;;  %s1512_s10 = sld [smem:[#allocation2 + $0x4]]  ;;  %s1514_s11 = sld [smem:[#allocation2 + $0x5]] }
  0x59   : > { %v380_v57 = vadd.f32 %v379_v39, %v376_v49  ;;  %v418_v63 = vmul.f32 %v417_v60, %v1393_v7  ;;  %v419_v0 = vstv %s1448_s16  ;;  %v422_v2 = vstv %s1455_s18  ;;  %s1516_s12 = sld [smem:[#allocation2 + $0x6]]  ;;  %s1518_s13 = sld [smem:[#allocation2 + $0x7]] }
  0x5a   : > { %1067 = vmatprep.mubr.msk.f32.mxu0 %vm443_vm0, %v1477_v53  ;;  %v426_v3 = vstv %s1457_s19  ;;  %v430_v4 = vstv %s1462_s20  ;;  %v402_v5 = vadd.f32 %v401_v55, %v398_v61  ;;  %v423_v10 = vmul.f32 %v422_v2, %v1396_v8  ;;  %s1520_s14 = sld [smem:[#allocation2 + $0x8]]  ;;  %s1522_s15 = sld [smem:[#allocation2 + $0x9]] }
  0x5b   : > { %v384_v1 = vadd.f32 %v383_v42, %v380_v57  ;;  %v420_v6 = vadd.f32 %v419_v0, %v418_v63  ;;  %v427_v11 = vmul.f32 %v426_v3, %v1399_v9  ;;  %v434_v14 = vstv %s1467_s21  ;;  %s1524_s16 = sld [smem:[#allocation2 + $0xa]]  ;;  %s1526_s17 = sld [smem:[#allocation2 + $0xb]] }
  0x5c   : > { %v406_v15 = vadd.f32 %v405_v58, %v402_v5  ;;  %v413_v16 = vmul.f32 %v412_v62, %v1436_v25  ;;  %v431_v7 = vmul.f32 %v430_v4, %v1407_v13  ;;  %v438_v18 = vstv %s1475_s22  ;;  %s1531_s18 = sld [smem:[#allocation2 + $0xc]]  ;;  %s1536_s19 = sld [smem:[#allocation2 + $0xd]] }
  0x5d   : > { %v1494_v12 = vadd.f32 %v387_v50, %v384_v1  ;;  %v424_v17 = vadd.f32 %v423_v10, %v420_v6  ;;  %v435_v22 = vmul.f32 %v434_v14, %v1421_v19  ;;  %v439_v23 = vmul.f32 %v438_v18, %v1436_v25  ;;  %s1543_s20 = sld [smem:[#allocation2 + $0xe]]  ;;  %s1546_s21 = sld [smem:[#allocation2 + $0xf]] }
  0x5e   : > { %v410_v20 = vadd.f32 %v409_v59, %v406_v15  ;;  %v645_v13 = vstv %s644_s23  ;;  %v648_v19 = vstv %s647_s25  ;;  %v697_v25 = vstv %s1009_s26  ;;  %s1552_s22 = sld [smem:[#allocation2 + $0x14]]  ;;  %s1554_s23 = sld [smem:[#allocation2 + $0x15]] }
  0x5f   : > { %1068 = vmatmul.mubr.msk.f32.vlgmr.msra.gmra.mrb[0].mxu0 %vm443_vm0, %v1494_v12  ;;  %v428_v21 = vadd.f32 %v427_v11, %v424_v17  ;;  %v700_v27 = vstv %s1010_s27  ;;  %v749_v28 = vstv %s1022_s29  ;;  %v752_v29 = vstv %s1023_s30  ;;  %s1558_s25 = sld [smem:[#allocation2 + $0x16]]  ;;  %s1560_s26 = sld [smem:[#allocation2 + $0x17]] }
  0x60   : > { %v1503_v8 = vadd.f32 %v413_v16, %v410_v20  ;;  %v801_v30 = vstv %s1035_s8  ;;  %v804_v31 = vstv %s1036_s9  ;;  %v646_v32 = vadd.f32 %v645_v13, %v1477_v53  ;;  %s1565_s27 = sld [smem:[#allocation2 + $0x10]]  ;;  %s1567_s29 = sld [smem:[#allocation2 + $0x11]] }
  0x61   : > { %v432_v9 = vadd.f32 %v431_v7, %v428_v21  ;;  %v649_v33 = vmul.f32 %v648_v19, %v1477_v53  ;;  %v652_v34 = vstv %s1512_s10  ;;  %v698_v35 = vadd.f32 %v697_v25, %v1494_v12  ;;  %s1572_s30 = sld [smem:[#allocation2 + $0x12]]  ;;  %s1574_s8 = sld [smem:[#allocation2 + $0x13]] }
  0x62   : > { %1070 = vmatprep.mubr.msk.f32.mxu0 %vm443_vm0, %v1503_v8  ;;  %v701_v36 = vmul.f32 %v700_v27, %v1477_v53  ;;  %v704_v37 = vstv %s1514_s11  ;;  %v750_v38 = vadd.f32 %v749_v28, %v1503_v8  ;;  %v753_v39 = vmul.f32 %v752_v29, %v1477_v53  ;;  %s1588_s9 = sld [smem:[#allocation2 + $0x1c]]  ;;  %s1590_s10 = sld [smem:[#allocation2 + $0x1d]] }
  0x63   : > { %v436_v24 = vadd.f32 %v435_v22, %v432_v9  ;;  %v805_v41 = vmul.f32 %v804_v31, %v1477_v53  ;;  %v756_v42 = vstv %s1516_s12  ;;  %v808_v43 = vstv %s1518_s13  ;;  %s1596_s11 = sld [smem:[#allocation2 + $0x18]]  ;;  %s1598_s12 = sld [smem:[#allocation2 + $0x19]] }
  0x64   : > { %v650_v44 = vadd.f32 %v649_v33, %v646_v32  ;;  %v653_v45 = vmul.f32 %v652_v34, %v1494_v12  ;;  %v656_v46 = vstv %s1520_s14  ;;  %v702_v47 = vadd.f32 %v701_v36, %v698_v35  ;;  %s1600_s13 = sld [smem:[#allocation2 + $0x1a]]  ;;  %s1602_s14 = sld [smem:[#allocation2 + $0x1b]] }
  0x65   : > { %v1508_v26 = vadd.f32 %v439_v23, %v436_v24  ;;  %v705_v48 = vmul.f32 %v704_v37, %v1494_v12  ;;  %v708_v49 = vstv %s1522_s15  ;;  %v754_v50 = vadd.f32 %v753_v39, %v750_v38  ;;  %s1604_s15 = sld [smem:[#allocation2 + $0x1e]] }
  0x66   : > { %v757_v51 = vmul.f32 %v756_v42, %v1494_v12  ;;  %v809_v54 = vmul.f32 %v808_v43, %v1494_v12  ;;  %v760_v55 = vstv %s1524_s16  ;;  %v812_v56 = vstv %s1526_s17  ;;  %s1606_s16 = sld [smem:[#allocation2 + $0x1f]]  ;;  %s1620_s17 = sld [smem:[#allocation2 + $0x24]] }
  0x67   : > { %1071 = vmatmul.mubr.msk.f32.gmra.mrb[2].mxu0 %vm443_vm0, %v1508_v26  ;;  %v802_v40 = vadd.f32 %v801_v30, %v1508_v26  ;;  %v654_v57 = vadd.f32 %v653_v45, %v650_v44  ;;  %v657_v58 = vmul.f32 %v656_v46, %v1503_v8  ;;  %v660_v59 = vstv %s1531_s18  ;;  %s1622_s18 = sld [smem:[#allocation2 + $0x25]] }
  0x68   : > { %v706_v60 = vadd.f32 %v705_v48, %v702_v47  ;;  %v709_v61 = vmul.f32 %v708_v49, %v1503_v8  ;;  %v712_v62 = vstv %s1536_s19  ;;  %v758_v63 = vadd.f32 %v757_v51, %v754_v50  ;;  %s1005_s19 = sld [smem:[#allocation2 + $0x20]] }
  0x69   : > { %v806_v52 = vadd.f32 %v805_v41, %v802_v40  ;;  %v761_v0 = vmul.f32 %v760_v55, %v1503_v8  ;;  %v813_v2 = vmul.f32 %v812_v56, %v1503_v8  ;;  %v764_v3 = vstv %s1543_s20  ;;  %s1018_s20 = sld [smem:[#allocation2 + $0x21]] }
  0x6a   : > { %v816_v4 = vstv %s1546_s21  ;;  %v658_v5 = vadd.f32 %v657_v58, %v654_v57  ;;  %v661_v6 = vmul.f32 %v660_v59, %v1508_v26  ;;  %v710_v10 = vadd.f32 %v709_v61, %v706_v60  ;;  %s1031_s21 = sld [smem:[#allocation2 + $0x22]] }
  0x6b   : > { %v810_v1 = vadd.f32 %v809_v54, %v806_v52  ;;  %v713_v11 = vmul.f32 %v712_v62, %v1508_v26  ;;  %v762_v14 = vadd.f32 %v761_v0, %v758_v63  ;;  %v765_v15 = vmul.f32 %v764_v3, %v1508_v26 }
  0x6c   : > { %v817_v17 = vmul.f32 %v816_v4, %v1508_v26  ;;  %v668_v7 = vstv %s1552_s22  ;;  %v720_v18 = vstv %s1554_s23  ;;  %v772_v20 = vstv %s1558_s25  ;;  %s1044_s22 = sld [smem:[#allocation2 + $0x23]]  ;;  %s1032_s23 = sld [smem:[#allocation2 + $0x26]] }
  0x6d   : > { %v814_v16 = vadd.f32 %v813_v2, %v810_v1  ;;  %v824_v21 = vstv %s1560_s26  ;;  %v664_v22 = vstv %s1565_s27  ;;  %v716_v9 = vstv %s1567_s29  ;;  %s1045_s25 = sld [smem:[#allocation2 + $0x27]]  ;;  %s1625_s26 = sld [smem:[#allocation2 + $0x2c]] }
  0x6e   : > { %v768_v23 = vstv %s1572_s30  ;;  %v820_v24 = vstv %s1574_s8  ;;  %v662_v19 = vadd.f32 %v661_v6, %v658_v5  ;;  %v714_v25 = vadd.f32 %v713_v11, %v710_v10  ;;  %s1627_s27 = sld [smem:[#allocation2 + $0x2d]]  ;;  %s1630_s29 = sld [smem:[#allocation2 + $0x28]] }
  0x6f   : > { %v766_v27 = vadd.f32 %v765_v15, %v762_v14  ;;  %v818_v28 = vadd.f32 %v817_v17, %v814_v16  ;;  %v672_v46 = vstv %s1596_s11  ;;  %v724_v47 = vstv %s1598_s12  ;;  %s1632_s30 = sld [smem:[#allocation2 + $0x29]]  ;;  %s1636_s8 = sld [smem:[#allocation2 + $0x2a]] }
  0x70   : > { %v776_v48 = vstv %s1600_s13  ;;  %v828_v49 = vstv %s1602_s14  ;;  %v676_v51 = vstv %s1588_s9  ;;  %v728_v52 = vstv %s1590_s10  ;;  %s1638_s9 = sld [smem:[#allocation2 + $0x2b]]  ;;  %s1640_s10 = sld [smem:[#allocation2 + $0x2e]] }
  0x71   : > { %v780_v54 = vstv %s1604_s15  ;;  %v832_v55 = vstv %s1606_s16  ;;  %v684_v15 = vstv %s1620_s17  ;;  %v680_v16 = vstv %s1005_s19  ;;  %s1642_s11 = sld [smem:[#allocation2 + $0x2f]]  ;;  %s1050_s12 = sshll.u32 %s1676_s28, 5 }
  0x72   : > { %s330_s15 = scalar_lea.vmem %s1672_s7, %s1050_s12 }
 0x132   : > { %v1069_v13 = vpop.f32.mrb[0].mxu0 }
 0x133   : > { %v522_v29 = vpop.f32.mrb[1].mxu0  ;;  %v669_v34 = vmul.f32 %v1069_v13, %v668_v7  ;;  %v721_v35 = vmul.f32 %v1069_v13, %v720_v18  ;;  %v773_v36 = vmul.f32 %v1069_v13, %v772_v20  ;;  %v825_v37 = vmul.f32 %v1069_v13, %v824_v21 }
 0x134   : > { %v665_v30 = vmul.f32 %v664_v22, %v522_v29  ;;  %v717_v31 = vmul.f32 %v716_v9, %v522_v29  ;;  %v769_v32 = vmul.f32 %v768_v23, %v522_v29  ;;  %v821_v33 = vmul.f32 %v820_v24, %v522_v29  ;;  %1077 = vmatprep.mubr.msk.f32.mxu1 %vm443_vm0, %v522_v29 }
 0x135   : > { %1078 = vmatmul.mubr.msk.f32.vlgmr.msra.gmra.mrb[0].mxu1 %vm443_vm0, %v1069_v13  ;;  %v732_v18 = vstv %s1018_s20  ;;  %v784_v20 = vstv %s1031_s21  ;;  %v836_v21 = vstv %s1044_s22  ;;  %v736_v22 = vstv %s1622_s18 }
 0x136   : > { %v666_v38 = vadd.f32 %v665_v30, %v662_v19  ;;  %v718_v39 = vadd.f32 %v717_v31, %v714_v25  ;;  %v770_v40 = vadd.f32 %v769_v32, %v766_v27  ;;  %v822_v41 = vadd.f32 %v821_v33, %v818_v28 }
 0x137   : > { %v788_v9 = vstv %s1032_s23  ;;  %v840_v23 = vstv %s1045_s25 }
 0x138   : > { %v670_v42 = vadd.f32 %v669_v34, %v666_v38  ;;  %v722_v43 = vadd.f32 %v721_v35, %v718_v39  ;;  %v774_v44 = vadd.f32 %v773_v36, %v770_v40  ;;  %v826_v45 = vadd.f32 %v825_v37, %v822_v41 }
 0x139   : > { %v692_v39 = vstv %s1625_s26  ;;  %v688_v40 = vstv %s1630_s29 }
 0x13a   : > { %v1072_v50 = vpop.f32.mrb[2].mxu0 }
 0x13b   : > { %v532_v56 = vpop.f32.mrb[3].mxu0  ;;  %v677_v61 = vmul.f32 %v1072_v50, %v676_v51  ;;  %v729_v62 = vmul.f32 %v1072_v50, %v728_v52  ;;  %v781_v63 = vmul.f32 %v1072_v50, %v780_v54  ;;  %v833_v0 = vmul.f32 %v1072_v50, %v832_v55 }
 0x13c   : > { %v673_v57 = vmul.f32 %v672_v46, %v532_v56  ;;  %v725_v58 = vmul.f32 %v724_v47, %v532_v56  ;;  %v777_v59 = vmul.f32 %v776_v48, %v532_v56  ;;  %v829_v60 = vmul.f32 %v828_v49, %v532_v56  ;;  %1080 = vmatprep.mubr.msk.f32.mxu1 %vm443_vm0, %v532_v56 }
 0x13d   : > { %1081 = vmatmul.mubr.msk.f32.gmra.mrb[2].mxu1 %vm443_vm0, %v1072_v50  ;;  %v744_v46 = vstv %s1627_s27  ;;  %v796_v47 = vstv %s1640_s10  ;;  %v848_v48 = vstv %s1642_s11 }
 0x13e   : > { %v674_v1 = vadd.f32 %v673_v57, %v670_v42  ;;  %v726_v2 = vadd.f32 %v725_v58, %v722_v43  ;;  %v778_v3 = vadd.f32 %v777_v59, %v774_v44  ;;  %v830_v4 = vadd.f32 %v829_v60, %v826_v45 }
 0x13f   : > { %v740_v43 = vstv %s1632_s30  ;;  %v792_v44 = vstv %s1636_s8  ;;  %v844_v45 = vstv %s1638_s9 }
 0x140   : > { %v678_v5 = vadd.f32 %v677_v61, %v674_v1  ;;  %v730_v6 = vadd.f32 %v729_v62, %v726_v2  ;;  %v782_v10 = vadd.f32 %v781_v63, %v778_v3  ;;  %v834_v11 = vadd.f32 %v833_v0, %v830_v4 }
 0x208   : > { %v1079_v14 = vpop.f32.mrb[0].mxu1 }
 0x209   : > { %v641_v17 = vsub.f32 %v1079_v14, %v1494_v12  ;;  %v621_v7 = vpop.f32.mrb[1].mxu1 }
 0x20a   : > { %v640_v24 = vsub.f32 %v621_v7, %v1477_v53 }
 0x20b   : > { %v685_v27 = vmul.f32 %v684_v15, %v641_v17  ;;  %v737_v28 = vmul.f32 %v736_v22, %v641_v17  ;;  %v789_v29 = vmul.f32 %v788_v9, %v641_v17  ;;  %v841_v53 = vmul.f32 %v840_v23, %v641_v17 }
 0x20c   : > { %v681_v12 = vmul.f32 %v680_v16, %v640_v24  ;;  %v733_v13 = vmul.f32 %v732_v18, %v640_v24  ;;  %v785_v19 = vmul.f32 %v784_v20, %v640_v24  ;;  %v837_v25 = vmul.f32 %v836_v21, %v640_v24 }
 0x20e   : > { %v682_v30 = vadd.f32 %v681_v12, %v678_v5  ;;  %v734_v31 = vadd.f32 %v733_v13, %v730_v6  ;;  %v786_v32 = vadd.f32 %v785_v19, %v782_v10  ;;  %v838_v33 = vadd.f32 %v837_v25, %v834_v11 }
 0x210   : > { %v686_v34 = vadd.f32 %v685_v27, %v682_v30  ;;  %v738_v35 = vadd.f32 %v737_v28, %v734_v31  ;;  %v790_v36 = vadd.f32 %v789_v29, %v786_v32  ;;  %v842_v37 = vadd.f32 %v841_v53, %v838_v33  ;;  %v1082_v38 = vpop.f32.mrb[2].mxu1 }
 0x211   : > { %v643_v41 = vsub.f32 %v1082_v38, %v1508_v26  ;;  %v631_v42 = vpop.f32.mrb[3].mxu1 }
 0x212   : > { %v642_v49 = vsub.f32 %v631_v42, %v1503_v8 }
 0x213   : > { %v693_v55 = vmul.f32 %v692_v39, %v643_v41  ;;  %v745_v56 = vmul.f32 %v744_v46, %v643_v41  ;;  %v797_v57 = vmul.f32 %v796_v47, %v643_v41  ;;  %v849_v58 = vmul.f32 %v848_v48, %v643_v41 }
 0x214   : > { %v689_v50 = vmul.f32 %v688_v40, %v642_v49  ;;  %v741_v51 = vmul.f32 %v740_v43, %v642_v49  ;;  %v793_v52 = vmul.f32 %v792_v44, %v642_v49  ;;  %v845_v54 = vmul.f32 %v844_v45, %v642_v49 }
 0x216   : > { %v690_v59 = vadd.f32 %v689_v50, %v686_v34  ;;  %v742_v26 = vadd.f32 %v741_v51, %v738_v35  ;;  %v794_v60 = vadd.f32 %v793_v52, %v790_v36  ;;  %v846_v61 = vadd.f32 %v845_v54, %v842_v37 }
 0x218   : > { %v694_v62 = vadd.f32 %v693_v55, %v690_v59  ;;  %v746_v63 = vadd.f32 %v745_v56, %v742_v26  ;;  %v798_v8 = vadd.f32 %v797_v57, %v794_v60  ;;  %v850_v0 = vadd.f32 %v849_v58, %v846_v61 }
 0x21a   : > { %695 = vst.msk [vmem:[%s330_s15] sm:$0xff] %vm443_vm0, %v694_v62  ;;  %747 = vst.msk [vmem:[%s330_s15 + $0x8] sm:$0xff] %vm443_vm0, %v746_v63 }
 0x21b   : > { %799 = vst.msk [vmem:[%s330_s15 + $0x10] sm:$0xff] %vm443_vm0, %v798_v8  ;;  %851 = vst.msk [vmem:[%s330_s15 + $0x18] sm:$0xff] %vm443_vm0, %v850_v0 }
 0x21c PF: > { %s20_s24 = sadd.s32 1, %s1219_s24  }
 0x21d   : > { %p17_p2 = scmp.ge.s32.totalorder %s20_s24, 4  }
 0x21f   :  { %19 = sbr.rel (!%p17_p2) target bundleno = 3 (0x3), region = 95 }
 0x226   :  { %873 = vsyncpa [#allocation3], 1 }
 0x227   :  { %875 = vsyncpa [#allocation3 + $0x1], 1 }
 0x228   :  { %876 = vsyncpa [#allocation5], 1 }
 0x229   :  { %877 = vsyncpa [#allocation8], 1 }

</bundles_post_ra>
